<compile_context>
chip_gen: v7x
topology: tpu7x:2x2x1
jax: 0.10.0
libtpu: 0.0.40
codegen_flags: <defaults>
</compile_context>

<pallas_src>
import numpy as np
import jax
import jax.numpy as jnp
from jax import lax
from jax.experimental import pallas as pl
from jax.experimental.pallas import tpu as pltpu


def _pick_tile(n, prefer):
    """Largest multiple-of-8 divisor of n that is <= prefer, else n itself."""
    for t in (512, 256, 128, 64, 32, 16, 8):
        if t <= prefer and t <= n and n % t == 0:
            return t
    return n  # block dim == full array dim is always legal


def _hard_col_table(hard_indices, batch_size):
    """[2B, K] int32: real column ids (mod B) of each row's hard negatives.

    torch scatters hard_indices into a row with the self column removed
    (indices in [0, B-1)); map back to real column ids in [0, B):
        col = h + (h >= row),  row = i mod B.
    """
    B = batch_size
    h = hard_indices.astype(jnp.int32)                    # [B, K]
    r = jnp.arange(B, dtype=jnp.int32)[:, None]           # [B, 1]
    cols = h + (h >= r).astype(jnp.int32)                 # [B, K] in [0, B)
    return jnp.tile(cols, (2, 1))                         # [2B, K]


def vascl_nbidir(features_1, features_2, hard_indices, temperature=0.05):
    B, D = features_1.shape
    K = hard_indices.shape[1]
    R = 2 * B
    inv_t = 1.0 / float(temperature)

    feats = jnp.concatenate([features_1, features_2], axis=0)     # [2B, D]
    d_pad = ((D + 127) // 128) * 128
    if d_pad != D:
        # zero padding on the lane axis leaves all dot products unchanged
        feats = jnp.pad(feats, ((0, 0), (0, d_pad - D)))
    hard_cols = _hard_col_table(hard_indices, B)                  # [2B, K]

    tm = _pick_tile(R, 256)   # row tile
    tn = _pick_tile(R, 512)   # column (reduction) tile, lane-dense
    n_row = R // tm
    n_col = R // tn

    def kernel(lhs_ref, rhs_ref, hc_ref, out_ref, den_acc, sp_acc):
        i = pl.program_id(0)
        k = pl.program_id(1)

        @pl.when(k == 0)
        def _init():
            den_acc[...] = jnp.zeros_like(den_acc)
            sp_acc[...] = jnp.zeros_like(sp_acc)

        # bf16 MXU matmul with f32 accumulation; fold 1/T into the lhs rows.
        a = (lhs_ref[...] * inv_t).astype(jnp.bfloat16)            # [tm, Dp]
        b = rhs_ref[...].astype(jnp.bfloat16)                      # [tn, Dp]
        s = lax.dot_general(a, b, (((1,), (1,)), ((), ())),
                            preferred_element_type=jnp.float32)    # [tm,tn]=sim/T

        # global row / column ids for this tile
        row = i * tm + lax.broadcasted_iota(jnp.int32, (tm, 1), 0)   # [tm, 1]
        col = k * tn + lax.broadcasted_iota(jnp.int32, (tm, tn), 1)  # [tm, tn]
        pos_col = jnp.where(row < B, row + B, row - B)               # [tm, 1]
        col_mod = jnp.where(col >= B, col - B, col)                  # [tm, tn]

        is_pos = col == pos_col                                      # [tm, tn]
        hc = hc_ref[...]                                             # [tm, K]
        sel = is_pos
        for kk in range(K):                                          # K is tiny
            sel = sel | (col_mod == hc[:, kk:kk + 1])

        # single exp pass over the tile, one masked row-sum (denominator)
        den_acc[...] += jnp.sum(jnp.where(sel, jnp.exp(s), 0.0),
                                axis=-1, keepdims=True)
        # positive logit (already includes 1/T); exactly one column matches
        sp_acc[...] += jnp.sum(jnp.where(is_pos, s, 0.0),
                               axis=-1, keepdims=True)

        @pl.when(k == pl.num_programs(1) - 1)
        def _finalize():
            # -log(pos / (Ng + pos)) == log(Ng + e^{s_pos}) - s_pos
            out_ref[...] = jnp.log(den_acc[...]) - sp_acc[...]

    row_loss = pl.pallas_call(
        kernel,
        out_shape=jax.ShapeDtypeStruct((R, 1), jnp.float32),
        grid_spec=pltpu.PrefetchScalarGridSpec(
            num_scalar_prefetch=0,
            grid=(n_row, n_col),
            in_specs=[
                pl.BlockSpec((tm, d_pad), lambda i, k: (i, 0)),   # lhs rows
                pl.BlockSpec((tn, d_pad), lambda i, k: (k, 0)),   # rhs rows
                pl.BlockSpec((tm, K), lambda i, k: (i, 0)),       # hard col ids
            ],
            out_specs=pl.BlockSpec((tm, 1), lambda i, k: (i, 0)),
            scratch_shapes=[
                pltpu.VMEM((tm, 1), jnp.float32),   # Ng + pos (exp space)
                pltpu.VMEM((tm, 1), jnp.float32),   # positive logit s_pos
            ],
        ),
        compiler_params=pltpu.CompilerParams(
            dimension_semantics=("parallel", "arbitrary"),
        ),
    )(feats, feats, hard_cols)

    return {"lds_loss": jnp.mean(row_loss)}


def _torch_reference_numpy(f1, f2, hard_indices, temperature=0.05):
    """Numpy re-implementation of the exact torch forward (for checking)."""
    B, _ = f1.shape
    feats = np.concatenate([f1, f2], axis=0)
    mask = ~np.tile(np.eye(B, dtype=bool), (2, 2))
    pos = np.exp(np.sum(f1 * f2, axis=-1) / temperature)
    pos = np.concatenate([pos, pos], axis=0)
    neg = np.exp(feats @ feats.T / temperature)
    neg = neg[mask].reshape(2 * B, -1)
    hm = np.zeros((B, B - 1), dtype=bool)
    hm[np.arange(B)[:, None], hard_indices] = True
    hard_mask = np.tile(hm, (2, 2))
    hardneg = neg[hard_mask].reshape(2 * B, -1)
    Ng = hardneg.sum(axis=-1)
    return np.mean(-np.log(pos / (Ng + pos)))


if __name__ == "__main__":
    B, D, K = 8, 32, 3  # batch, feature dim, #hard negatives per example

    key = jax.random.PRNGKey(0)
    k1, k2, k3 = jax.random.split(key, 3)
    f1 = jax.random.normal(k1, (B, D), dtype=jnp.float32)
    f2 = jax.random.normal(k2, (B, D), dtype=jnp.float32)
    # L2-normalize (contrastive embeddings); keeps exp(sim/T) finite.
    f1 = f1 / jnp.linalg.norm(f1, axis=-1, keepdims=True)
    f2 = f2 / jnp.linalg.norm(f2, axis=-1, keepdims=True)
    # K unique hard-negative indices per row, drawn from [0, B-1).
    perm = jax.vmap(lambda kk: jax.random.permutation(kk, B - 1))(
        jax.random.split(k3, B)
    )
    hard_indices = perm[:, :K].astype(jnp.int32)

    out = vascl_nbidir(f1, f2, hard_indices, temperature=0.05)
    loss = jax.block_until_ready(out["lds_loss"])

    ref = _torch_reference_numpy(
        np.asarray(f1), np.asarray(f2), np.asarray(hard_indices), 0.05
    )
    # bf16 matmul (f32 accumulation) => modest tolerance vs the f64 reference.
    np.testing.assert_allclose(np.asarray(loss), ref, rtol=2e-2, atol=2e-2)
    print("KERNEL_OK")
</pallas_src>

<mosaic_0001>
module attributes {stable_mosaic.version = 11 : i64} {
  func.func @kernel(%arg0: i32, %arg1: i32, %arg2: memref<16x128xf32, #tpu.memory_space<vmem>>, %arg3: memref<16x128xf32, #tpu.memory_space<vmem>>, %arg4: memref<16x3xi32, #tpu.memory_space<vmem>>, %arg5: memref<16x1xf32, #tpu.memory_space<vmem>>, %arg6: memref<16x1xf32, #tpu.memory_space<vmem>>, %arg7: memref<16x1xf32, #tpu.memory_space<vmem>>) attributes {dimension_semantics = [#tpu.dimension_semantics<parallel>, #tpu.dimension_semantics<arbitrary>], iteration_bounds = array<i64: 1, 1>, scalar_prefetch = 0 : i64, scratch_operands = 2 : i64, tpu.core_type = #tpu.core_type<tc>, window_params = [{transform_indices = @transform_0, window_bounds = array<i64: 16, 128>}, {transform_indices = @transform_1, window_bounds = array<i64: 16, 128>}, {transform_indices = @transform_2, window_bounds = array<i64: 16, 3>}, {transform_indices = @transform_3, window_bounds = array<i64: 16, 1>}]} {
    %c0_i32 = arith.constant 0 : i32
    %0 = arith.cmpi eq, %arg1, %c0_i32 : i32
    %1 = arith.extui %0 : i1 to i32
    %c0_i32_0 = arith.constant 0 : i32
    %2 = arith.cmpi ne, %1, %c0_i32_0 : i32
    scf.if %2 {
      %cst_26 = arith.constant 0.000000e+00 : f32
      %63 = vector.broadcast %cst_26 : f32 to vector<16x1xf32>
      %c0_27 = arith.constant 0 : index
      %c0_28 = arith.constant 0 : index
      %64 = vector.load %arg6[%c0_27, %c0_28] : memref<16x1xf32, #tpu.memory_space<vmem>>, vector<16x1xf32>
      tpu.vector_store %arg6[%c0_27, %c0_28], %63 {strides = array<i32>} : memref<16x1xf32, #tpu.memory_space<vmem>>, vector<16x1xf32>,
      %cst_29 = arith.constant 0.000000e+00 : f32
      %65 = vector.broadcast %cst_29 : f32 to vector<16x1xf32>
      %c0_30 = arith.constant 0 : index
      %c0_31 = arith.constant 0 : index
      %66 = vector.load %arg7[%c0_30, %c0_31] : memref<16x1xf32, #tpu.memory_space<vmem>>, vector<16x1xf32>
      tpu.vector_store %arg7[%c0_30, %c0_31], %65 {strides = array<i32>} : memref<16x1xf32, #tpu.memory_space<vmem>>, vector<16x1xf32>,
    } else {
    }
    %c0 = arith.constant 0 : index
    %c0_1 = arith.constant 0 : index
    %3 = vector.load %arg2[%c0, %c0_1] : memref<16x128xf32, #tpu.memory_space<vmem>>, vector<16x128xf32>
    %cst = arith.constant 2.000000e+01 : f32
    %4 = vector.broadcast %cst : f32 to vector<16x128xf32>
    %5 = arith.mulf %3, %4 : vector<16x128xf32>
    %6 = arith.truncf %5 : vector<16x128xf32> to vector<16x128xbf16>
    %c0_2 = arith.constant 0 : index
    %c0_3 = arith.constant 0 : index
    %7 = vector.load %arg3[%c0_2, %c0_3] : memref<16x128xf32, #tpu.memory_space<vmem>>, vector<16x128xf32>
    %8 = arith.truncf %7 : vector<16x128xf32> to vector<16x128xbf16>
    %cst_4 = arith.constant dense<0.000000e+00> : vector<16x16xf32>
    %9 = tpu.matmul %6, %8, %cst_4 {dimension_numbers = #tpu.dot_dimension_numbers<[1], [1], [0], [0], [0, 0, 1, 0], [], []>} : vector<16x128xbf16>, vector<16x128xbf16>, vector<16x16xf32> -> vector<16x16xf32>
    %c16_i32 = arith.constant 16 : i32
    %10 = arith.muli %arg0, %c16_i32 : i32
    %11 = tpu.iota {dimensions = array<i32: 0>} : vector<16x1xi32>
    %12 = vector.broadcast %10 : i32 to vector<16x1xi32>
    %13 = arith.addi %12, %11 : vector<16x1xi32>
    %c16_i32_5 = arith.constant 16 : i32
    %14 = arith.muli %arg1, %c16_i32_5 : i32
    %15 = tpu.iota {dimensions = array<i32: 1>} : vector<16x16xi32>
    %16 = vector.broadcast %14 : i32 to vector<16x16xi32>
    %17 = arith.addi %16, %15 : vector<16x16xi32>
    %c8_i32 = arith.constant 8 : i32
    %18 = vector.broadcast %c8_i32 : i32 to vector<16x1xi32>
    %19 = arith.cmpi slt, %13, %18 : vector<16x1xi32>
    %c8_i32_6 = arith.constant 8 : i32
    %20 = vector.broadcast %c8_i32_6 : i32 to vector<16x1xi32>
    %21 = arith.addi %13, %20 : vector<16x1xi32>
    %c8_i32_7 = arith.constant 8 : i32
    %22 = vector.broadcast %c8_i32_7 : i32 to vector<16x1xi32>
    %23 = arith.subi %13, %22 : vector<16x1xi32>
    %24 = arith.select %19, %21, %23 : vector<16x1xi1>, vector<16x1xi32>
    %c8_i32_8 = arith.constant 8 : i32
    %25 = vector.broadcast %c8_i32_8 : i32 to vector<16x16xi32>
    %26 = arith.cmpi sge, %17, %25 : vector<16x16xi32>
    %c8_i32_9 = arith.constant 8 : i32
    %27 = vector.broadcast %c8_i32_9 : i32 to vector<16x16xi32>
    %28 = arith.subi %17, %27 : vector<16x16xi32>
    %29 = arith.select %26, %28, %17 : vector<16x16xi1>, vector<16x16xi32>
    %30 = vector.broadcast %24 : vector<16x1xi32> to vector<16x16xi32>
    %31 = arith.cmpi eq, %17, %30 : vector<16x16xi32>
    %c0_10 = arith.constant 0 : index
    %c0_11 = arith.constant 0 : index
    %32 = vector.load %arg4[%c0_10, %c0_11] : memref<16x3xi32, #tpu.memory_space<vmem>>, vector<16x3xi32>
    %33 = vector.extract_strided_slice %32 {offsets = [0, 0], sizes = [16, 1], strides = [1, 1]} : vector<16x3xi32> to vector<16x1xi32>
    %34 = vector.broadcast %33 : vector<16x1xi32> to vector<16x16xi32>
    %35 = arith.cmpi eq, %29, %34 : vector<16x16xi32>
    %36 = arith.ori %31, %35 : vector<16x16xi1>
    %37 = vector.extract_strided_slice %32 {offsets = [0, 1], sizes = [16, 1], strides = [1, 1]} : vector<16x3xi32> to vector<16x1xi32>
    %38 = vector.broadcast %37 : vector<16x1xi32> to vector<16x16xi32>
    %39 = arith.cmpi eq, %29, %38 : vector<16x16xi32>
    %40 = arith.ori %36, %39 : vector<16x16xi1>
    %41 = vector.extract_strided_slice %32 {offsets = [0, 2], sizes = [16, 1], strides = [1, 1]} : vector<16x3xi32> to vector<16x1xi32>
    %42 = vector.broadcast %41 : vector<16x1xi32> to vector<16x16xi32>
    %43 = arith.cmpi eq, %29, %42 : vector<16x16xi32>
    %44 = arith.ori %40, %43 : vector<16x16xi1>
    %c0_12 = arith.constant 0 : index
    %c0_13 = arith.constant 0 : index
    %45 = vector.load %arg6[%c0_12, %c0_13] : memref<16x1xf32, #tpu.memory_space<vmem>>, vector<16x1xf32>
    %46 = math.exp %9 : vector<16x16xf32>
    %cst_14 = arith.constant 0.000000e+00 : f32
    %47 = vector.broadcast %cst_14 : f32 to vector<16x16xf32>
    %48 = arith.select %44, %46, %47 : vector<16x16xi1>, vector<16x16xf32>
    %cst_15 = arith.constant dense<0.000000e+00> : vector<16xf32>
    %49 = vector.multi_reduction <add>, %48, %cst_15 [1] : vector<16x16xf32> to vector<16xf32>
    %50 = vector.shape_cast %49 : vector<16xf32> to vector<16x1xf32>
    %51 = arith.addf %45, %50 : vector<16x1xf32>
    %c0_16 = arith.constant 0 : index
    %c0_17 = arith.constant 0 : index
    %52 = vector.load %arg6[%c0_16, %c0_17] : memref<16x1xf32, #tpu.memory_space<vmem>>, vector<16x1xf32>
    tpu.vector_store %arg6[%c0_16, %c0_17], %51 {strides = array<i32>} : memref<16x1xf32, #tpu.memory_space<vmem>>, vector<16x1xf32>,
    %c0_18 = arith.constant 0 : index
    %c0_19 = arith.constant 0 : index
    %53 = vector.load %arg7[%c0_18, %c0_19] : memref<16x1xf32, #tpu.memory_space<vmem>>, vector<16x1xf32>
    %cst_20 = arith.constant 0.000000e+00 : f32
    %54 = vector.broadcast %cst_20 : f32 to vector<16x16xf32>
    %55 = arith.select %31, %9, %54 : vector<16x16xi1>, vector<16x16xf32>
    %cst_21 = arith.constant dense<0.000000e+00> : vector<16xf32>
    %56 = vector.multi_reduction <add>, %55, %cst_21 [1] : vector<16x16xf32> to vector<16xf32>
    %57 = vector.shape_cast %56 : vector<16xf32> to vector<16x1xf32>
    %58 = arith.addf %53, %57 : vector<16x1xf32>
    %c0_22 = arith.constant 0 : index
    %c0_23 = arith.constant 0 : index
    %59 = vector.load %arg7[%c0_22, %c0_23] : memref<16x1xf32, #tpu.memory_space<vmem>>, vector<16x1xf32>
    tpu.vector_store %arg7[%c0_22, %c0_23], %58 {strides = array<i32>} : memref<16x1xf32, #tpu.memory_space<vmem>>, vector<16x1xf32>,
    %c0_i32_24 = arith.constant 0 : i32
    %60 = arith.cmpi eq, %arg1, %c0_i32_24 : i32
    %61 = arith.extui %60 : i1 to i32
    %c0_i32_25 = arith.constant 0 : i32
    %62 = arith.cmpi ne, %61, %c0_i32_25 : i32
    scf.if %62 {
      %c0_26 = arith.constant 0 : index
      %c0_27 = arith.constant 0 : index
      %63 = vector.load %arg6[%c0_26, %c0_27] : memref<16x1xf32, #tpu.memory_space<vmem>>, vector<16x1xf32>
      %64 = math.log %63 : vector<16x1xf32>
      %c0_28 = arith.constant 0 : index
      %c0_29 = arith.constant 0 : index
      %65 = vector.load %arg7[%c0_28, %c0_29] : memref<16x1xf32, #tpu.memory_space<vmem>>, vector<16x1xf32>
      %66 = arith.subf %64, %65 : vector<16x1xf32>
      %c0_30 = arith.constant 0 : index
      %c0_31 = arith.constant 0 : index
      %67 = vector.load %arg5[%c0_30, %c0_31] : memref<16x1xf32, #tpu.memory_space<vmem>>, vector<16x1xf32>
      tpu.vector_store %arg5[%c0_30, %c0_31], %66 {strides = array<i32>} : memref<16x1xf32, #tpu.memory_space<vmem>>, vector<16x1xf32>,
    } else {
    }
    return
  }
  func.func @transform_0(%arg0: i32, %arg1: i32) -> (i32, i32) {
    %c0_i32 = arith.constant 0 : i32
    %c0_i32_0 = arith.constant 0 : i32
    return %arg0, %c0_i32 : i32, i32
  }
  func.func @transform_1(%arg0: i32, %arg1: i32) -> (i32, i32) {
    %c0_i32 = arith.constant 0 : i32
    %c0_i32_0 = arith.constant 0 : i32
    return %arg1, %c0_i32 : i32, i32
  }
  func.func @transform_2(%arg0: i32, %arg1: i32) -> (i32, i32) {
    %c0_i32 = arith.constant 0 : i32
    %c0_i32_0 = arith.constant 0 : i32
    return %arg0, %c0_i32 : i32, i32
  }
  func.func @transform_3(%arg0: i32, %arg1: i32) -> (i32, i32) {
    %c0_i32 = arith.constant 0 : i32
    %c0_i32_0 = arith.constant 0 : i32
    return %arg0, %c0_i32 : i32, i32
  }
}

</mosaic_0001>

<bundles_post_ra>
// kernel: tpu_custom_call.1
= control target key start
LH: loop header
LB: loop body
LE: loop exit
PB: predicated region body
PF: predicated region fallthrough
CT: control target
= control target key end

     0   :  { %8 = vsyncpa [#allocation5], 0  ;;  %s253_s12 = smov [#allocation4]   ;;  %s325_s0 = inlined_call_operand.vmem [shape: f32[16,128], index: 0, kind: input, shape index: {}]   ;;  %s326_s1 = inlined_call_operand.hbm [shape: f32[16,128], index: 1, kind: input, shape index: {}]   ;;  %s327_s2 = inlined_call_operand.vmem [shape: s32[16,3], index: 2, kind: input, shape index: {}]   ;;  %s328_s3 = inlined_call_operand.vmem [shape: f32[16,1], index: 3, kind: output, shape index: {}]  }
   0x1   :  { %s16_s13 = sshll.u32 %s253_s12, 4  ;;  %s229_s16 = scalar_lea.hbm %s326_s1, 256  ;;  %s17_s13 = int_to_ptr.vmem [resolvable:$true] %s16_s13 }
   0x2   :  { %p230_p0 = scmp.ne.s32.totalorder %s326_s1, %s229_s16  ;;  %p233_p1 = scmp.lt.u32.totalorder %s229_s16, %s326_s1 }
   0x4   :  { %p235_p2 = pnand %p233_p1, %p230_p0 }
   0x6   :  { %238 = shalt.err (!%p235_p2)
}
   0x7   :  { %s239_s21 = scalar_lea.vmem %s17_s13, 256  ;;  %p244_p4 = scmp.lt.s32.totalorder %s17_s13, %s17_s13 }
   0x8   :  { %p240_p3 = scmp.ne.s32.totalorder %s17_s13, %s239_s21  ;;  %p245_p5 = scmp.lt.s32.totalorder %s239_s21, %s239_s21 }
   0xa   :  { %p246_p6 = por %p245_p5, %p244_p4 }
   0xc   :  { %p247_p7 = pnand %p246_p6, %p240_p3 }
   0xe   :  { %250 = shalt.err (!%p247_p7)
}
   0xf   :  { %s254_s22 = smov 128   ;;  %s255_s23 = smov 8  }
  0x10   :  { %22 = dma.hbm_to_vmem [thread:$0]  %s326_s1, 256, %s17_s13, [#allocation5], %s254_s22, %s254_s22, %s255_s23  }
  0x11   :  { %251 = dma.done.wait [#allocation5], 256  }
  0x12   :  { %252 = vsyncadd [#allocation5], 4294967040  ;;  %v256_v0 = vmov 0.0   ;;  %vm257_vm0 = vmmov 0   ;;  %v258_v1 = vmov 1   ;;  %v259_v2 = vmov 0  }
  0x13   :  { %203 = vmatprep.subr.bf16.mxu0 %v256_v0  ;;  %205 = vmatprep.mubr.msk.bf16.mxu0 %vm257_vm0, %v256_v0  ;;  %v43_v3 = vld [vmem:[#allocation4] sm:$0xff]  ;;  %v44_v4 = vld [vmem:[#allocation4 + $0x8] sm:$0xff]  ;;  %v260_v13 = vmov 2   ;;  %vm33_vm1 = vcmask 7168   ;;  %v88_v14 = vlaneseq  ;;  %vm152_vm0 = vcmask 130048  }
  0x14   :  { %218 = vset.pattern.permute.xlu1 %v258_v1  ;;  %217 = vset.pattern.permute.xlu0 %v259_v2  ;;  %v38_v5 = vld [vmem:[%s325_s0] sm:$0xff]  ;;  %v45_v6 = vpack.c.bf16 %v44_v4, %v43_v3  ;;  %v39_v7 = vld [vmem:[%s325_s0 + $0x8] sm:$0xff]  ;;  %34 = vst.msk [vmem:[#allocation2] sm:$0xff] %vm33_vm1, %v256_v0  ;;  %35 = vst.msk [vmem:[#allocation2 + $0x8] sm:$0xff] %vm33_vm1, %v256_v0 }
  0x15   :  { %v112_v8 = vld [vmem:[%s327_s2] sm:$0xff]  ;;  %v40_v9 = vmul.f32 20.0, %v38_v5  ;;  %v41_v10 = vmul.f32 20.0, %v39_v7  ;;  %v113_v11 = vld [vmem:[%s327_s2 + $0x8] sm:$0xff]  ;;  %36 = vst.msk [vmem:[#allocation3] sm:$0xff] %vm33_vm1, %v256_v0  ;;  %37 = vst.msk [vmem:[#allocation3 + $0x8] sm:$0xff] %vm33_vm1, %v256_v0 }
  0x16   :  { %125 = vperm.xlu1 %218, %v112_v8   ;;  %115 = vperm.xlu0 %217, %v112_v8   ;;  %v96_v15 = vand.u32 127, %v88_v14  ;;  %v89_v17 = vshrl.u32 %v88_v14, 7 }
  0x17   :  { %204 = vmatpush3.bf16.xpose.msra.mxu0 %v45_v6  ;;  %v42_v12 = vpack.c.bf16 %v41_v10, %v40_v9 }
  0x18   :  { %v200_v18 = vadd.s32 4294967288, %v96_v15  ;;  %vm107_vm2 = vcmp.ge.s32.totalorder %v96_v15, 8  ;;  %v90_v20 = vadd.s32 8, %v89_v17 }
  0x1a   :  { %128 = vperm.xlu1 %218, %v113_v11   ;;  %118 = vperm.xlu0 %217, %v113_v11   ;;  %v109_v22 = vsel %vm107_vm2, %v200_v18, %v96_v15  ;;  %v199_v30 = vadd.s32 4294967288, %v90_v20  ;;  %vm110_vm4 = vcmp.eq.s32.totalorder %v96_v15, %v90_v20 }
  0x1b   :  { %v144_v43 = vld [vmem:[#allocation2] sm:$0xff]  ;;  %v145_v45 = vld [vmem:[#allocation2 + $0x8] sm:$0xff] }
  0x1c   :  { %vm111_vm8 = vcmp.eq.s32.totalorder %v96_v15, %v199_v30  ;;  %v165_v48 = vld [vmem:[#allocation3 + $0x8] sm:$0xff]  ;;  %v164_v51 = vld [vmem:[#allocation3] sm:$0xff] }
  0x1e   :  { %206 = vmatmul.mubr.bf16.vlgmr.msra.gmra.mrb[0].mxu0 %v42_v12  ;;  %220 = vset.pattern.permute.xlu1 %v260_v13 }
  0x1f   :  { %219 = vset.pattern.permute.xlu0 %v260_v13  ;;  %138 = vperm.xlu1 %220, %v113_v11  }
  0x20   :  { %135 = vperm.xlu0 %219, %v112_v8  }
  0x95   :  { %v116_v16 = vpop.permute.xlu0 %115  ;;  %v126_v19 = vpop.permute.xlu1 %125 }
  0x96   :  { %vm120_vm3 = vcmp.eq.s32.totalorder %v109_v22, %v116_v16  ;;  %vm130_vm6 = vcmp.eq.s32.totalorder %v109_v22, %v126_v19 }
  0x97   :  { %vm122_vm7 = vmor %vm110_vm4, %vm120_vm3 }
  0x98   :  { %vm132_vm11 = vmor %vm122_vm7, %vm130_vm6 }
  0x99   :  { %v119_v24 = vpop.permute.xlu0 %118  ;;  %v129_v27 = vpop.permute.xlu1 %128 }
  0x9a   :  { %vm121_vm5 = vcmp.eq.s32.totalorder %v109_v22, %v119_v24  ;;  %vm131_vm9 = vcmp.eq.s32.totalorder %v109_v22, %v129_v27 }
  0x9b   :  { %vm123_vm10 = vmor %vm111_vm8, %vm121_vm5 }
  0x9c   :  { %vm133_vm13 = vmor %vm123_vm10, %vm131_vm9 }
  0x9e   :  { %v139_v32 = vpop.permute.xlu1 %138 }
  0x9f   :  { %v136_v31 = vpop.permute.xlu0 %135  ;;  %vm141_vm14 = vcmp.eq.s32.totalorder %v109_v22, %v139_v32 }
  0xa0   :  { %vm140_vm12 = vcmp.eq.s32.totalorder %v109_v22, %v136_v31  ;;  %vm143_vm2 = vmor %vm133_vm13, %vm141_vm14 }
  0xa1   :  { %vm142_vm15 = vmor %vm132_vm11, %vm140_vm12 }
  0xf1   :  { %v80_v21 = vpop.f32.mrb[0].mxu0 }
  0xf2   :  { %v146_v23 = vmul.f32 1.442695, %v80_v21  ;;  %v207_v25 = vpop.f32.mrb[1].mxu0  ;;  %v166_v40 = vsel %vm110_vm4, %v80_v21, 0.0 }
  0xf3   :  { %v83_v26 = vpop.f32.mrb[2].mxu0  ;;  %v168_v42 = vsel %vm152_vm0, %v166_v40, 0.0 }
  0xf4   :  { %221 = vpow2.f32 %v146_v23  ;;  %v148_v28 = vmul.f32 1.442695, %v83_v26  ;;  %v208_v29 = vpop.f32.mrb[3].mxu0  ;;  %v167_v38 = vsel %vm111_vm8, %v83_v26, 0.0 }
  0xf5   :  { %v171_v41 = vsel %vm152_vm0, %v167_v38, 0.0 }
  0xf6   :  { %223 = vpow2.f32 %v148_v28 }
  0xfe   :  { %v222_v33 = vpop.eup %221 }
  0xff   :  { %v150_v34 = vsel %vm142_vm15, %v222_v33, 0.0 }
 0x100   :  { %v224_v35 = vpop.eup %223  ;;  %v153_v36 = vsel %vm152_vm0, %v150_v34, 0.0 }
 0x101   :  { %154 = vadd.xlane.f32.xlu1 %v153_v36  ;;  %v151_v37 = vsel %vm143_vm2, %v224_v35, 0.0 }
 0x102   :  { %v156_v39 = vsel %vm152_vm0, %v151_v37, 0.0 }
 0x103   :  { %157 = vadd.xlane.f32.xlu0 %v156_v39 }
 0x105   :  { %172 = vadd.xlane.f32.xlu1 %v171_v41 }
 0x107   :  { %169 = vadd.xlane.f32.xlu0 %v168_v42 }
 0x18e   :  { %v155_v44 = vpop.xlane.xlu1 %154 }
 0x18f   :  { %v159_v46 = vadd.f32 %v155_v44, %v144_v43 }
 0x190   :  { %v158_v47 = vpop.xlane.xlu0 %157 }
 0x191   :  { %162 = vst.msk [vmem:[#allocation2] sm:$0xff] %vm33_vm1, %v159_v46  ;;  %v160_v49 = vadd.f32 %v158_v47, %v145_v45 }
 0x192   :  { %v173_v50 = vpop.xlane.xlu1 %172 }
 0x193   :  { %163 = vst.msk [vmem:[#allocation2 + $0x8] sm:$0xff] %vm33_vm1, %v160_v49  ;;  %v175_v52 = vadd.f32 %v173_v50, %v165_v48 }
 0x194   :  { %v170_v53 = vpop.xlane.xlu0 %169 }
 0x195   :  { %177 = vst.msk [vmem:[#allocation3 + $0x8] sm:$0xff] %vm33_vm1, %v175_v52  ;;  %v174_v54 = vadd.f32 %v170_v53, %v164_v51 }
 0x197   :  { %176 = vst.msk [vmem:[#allocation3] sm:$0xff] %vm33_vm1, %v174_v54 }
 0x198   :  { %v181_v55 = vld [vmem:[#allocation2] sm:$0xff] }
 0x199   :  { %225 = vlog2.f32 %v181_v55 }
 0x19a   :  { %v182_v56 = vld [vmem:[#allocation2 + $0x8] sm:$0xff] }
 0x19b   :  { %227 = vlog2.f32 %v182_v56 }
 0x19c   :  { %v188_v63 = vld [vmem:[#allocation3 + $0x8] sm:$0xff] }
 0x19e   :  { %v187_v60 = vld [vmem:[#allocation3] sm:$0xff] }
 0x1a3   :  { %v226_v57 = vpop.eup %225 }
 0x1a4   :  { %v184_v58 = vmul.f32 0.6931472, %v226_v57 }
 0x1a5   :  { %v228_v59 = vpop.eup %227 }
 0x1a6   :  { %v186_v61 = vmul.f32 0.6931472, %v228_v59  ;;  %v189_v62 = vsub.f32 %v184_v58, %v187_v60 }
 0x1a8   :  { %v190_v0 = vsub.f32 %v186_v61, %v188_v63  ;;  %191 = vst.msk [vmem:[%s328_s3] sm:$0xff] %vm33_vm1, %v189_v62 }
 0x1aa   :  { %192 = vst.msk [vmem:[%s328_s3 + $0x8] sm:$0xff] %vm33_vm1, %v190_v0 }
 0x1ab   :  { %197 = vsyncpa [#allocation5], 1 }

</bundles_post_ra>
